<compile_context>
chip_gen: v7x
topology: tpu7x:2x2x1
jax: 0.10.0
libtpu: 0.0.40
codegen_flags: <defaults>
</compile_context>

<pallas_src>
import functools

import jax
import jax.numpy as jnp
from jax.experimental import pallas as pl
from jax.experimental.pallas import tpu as pltpu


def _round_up(x, m):
    return ((x + m - 1) // m) * m


def _pick_batch_tile(B, tb_max):
    """Row-tile size for the batch axis.

    - B <= 8: one full-extent block (block dim == array dim satisfies the
      (8,128) rule even for tiny batches).
    - B  > 8: a multiple of 8, capped at tb_max, chosen so the grid has at
      least 2 tiles -> v7x's second TensorCore gets work. This is a no-op for
      single-TC v5e/v6e while still keeping tiles large (near-roofline).
    """
    if B <= 8:
        return B
    tb = _round_up(pl.cdiv(B, 2), 8)  # guarantees >= 2 batch tiles
    return max(8, min(tb, tb_max))


def _linear_kernel(x_ref, w_ref, b_ref, o_ref):
    # x_ref: [TB, D], w_ref: [D, C], b_ref: [1, C], o_ref: [TB, C]
    o_ref[...] = (
        jnp.dot(x_ref[...], w_ref[...], preferred_element_type=jnp.float32)
        + b_ref[...]
    )


@functools.partial(jax.jit, static_argnames=("last", "tb_max"))
def logistic_reg_net_forward(x, weight_t, bias, last=False, tb_max=2048):
    """Pallas implementation of LogisticRegNet.forward.

    x:        [B, D] float32
    weight_t: [D, C] float32  (transpose of PyTorch's [C, D] weight)
    bias:     [C]    float32
    Returns scores [B, C]; (scores, x) if last=True.
    """
    B, D = x.shape
    C = weight_t.shape[1]

    TB = _pick_batch_tile(B, tb_max)
    grid = (pl.cdiv(B, TB),)  # ragged last tile handled by Pallas (no pad)

    b2 = bias.reshape(1, C)

    cost = pl.CostEstimate(
        flops=2 * B * D * C,
        transcendentals=0,
        bytes_accessed=4 * (B * D + D * C + C + B * C),
    )

    scores = pl.pallas_call(
        _linear_kernel,
        out_shape=jax.ShapeDtypeStruct((B, C), jnp.float32),
        grid=grid,
        in_specs=[
            # x: one batch tile per grid step; full feature extent.
            pl.BlockSpec((TB, D), lambda i: (i, 0)),
            # Weight / bias: constant index map -> VMEM-resident across the
            # batch grid; single-buffered (no need to double-buffer a block
            # that never changes).
            pl.BlockSpec((D, C), lambda i: (0, 0), pipeline_mode=pl.Buffered(1)),
            pl.BlockSpec((1, C), lambda i: (0, 0), pipeline_mode=pl.Buffered(1)),
        ],
        out_specs=pl.BlockSpec((TB, C), lambda i: (i, 0)),
        compiler_params=pltpu.CompilerParams(
            # Batch tiles are independent rows: shard across v7x's two TCs.
            dimension_semantics=("parallel",),
        ),
        cost_estimate=cost,
    )(x, weight_t, b2)

    if last:
        return scores, x
    return scores


def init_params(key, input_dim, num_classes):
    """Deterministic init matching nn.Linear: U(-1/sqrt(in), 1/sqrt(in))."""
    k_w, k_b = jax.random.split(key)
    bound = 1.0 / jnp.sqrt(jnp.float32(input_dim))
    # PyTorch weight is [C, D]; store its transpose [D, C] for the kernel.
    w_pt = jax.random.uniform(
        k_w, (num_classes, input_dim), dtype=jnp.float32, minval=-bound, maxval=bound
    )
    b = jax.random.uniform(
        k_b, (num_classes,), dtype=jnp.float32, minval=-bound, maxval=bound
    )
    return w_pt.T, b


if __name__ == "__main__":
    key = jax.random.PRNGKey(0)
    k_x, k_p, k_x2 = jax.random.split(key, 3)

    batch, input_dim, num_classes = 8, 32, 10
    x = jax.random.normal(k_x, (batch, input_dim), dtype=jnp.float32)
    weight_t, bias = init_params(k_p, input_dim, num_classes)

    # last=False path
    scores = jax.block_until_ready(logistic_reg_net_forward(x, weight_t, bias))

    # last=True path
    scores_l, emb = logistic_reg_net_forward(x, weight_t, bias, last=True)
    scores_l = jax.block_until_ready(scores_l)
    emb = jax.block_until_ready(emb)

    ref = x @ weight_t + bias
    assert scores.shape == (batch, num_classes)
    assert jnp.allclose(scores, ref, atol=1e-5, rtol=1e-5)
    assert jnp.allclose(scores_l, ref, atol=1e-5, rtol=1e-5)
    assert jnp.allclose(emb, x)

    # Larger, non-tile-aligned batch: exercises the ragged last tile and the
    # >= 2-tile grid (v7x megacore sharding). No padding anywhere.
    big_batch = 1000
    x_big = jax.random.normal(k_x2, (big_batch, input_dim), dtype=jnp.float32)
    scores_big = jax.block_until_ready(
        logistic_reg_net_forward(x_big, weight_t, bias)
    )
    ref_big = x_big @ weight_t + bias
    assert scores_big.shape == (big_batch, num_classes)
    assert jnp.allclose(scores_big, ref_big, atol=1e-4, rtol=1e-4)

    print("KERNEL_OK")
</pallas_src>

<mosaic_0001>
module attributes {stable_mosaic.version = 11 : i64} {
  func.func @_linear_kernel(%arg0: i32, %arg1: memref<8x32xf32, #tpu.memory_space<vmem>>, %arg2: memref<32x10xf32, #tpu.memory_space<vmem>>, %arg3: memref<1x10xf32, #tpu.memory_space<vmem>>, %arg4: memref<8x10xf32, #tpu.memory_space<vmem>>) attributes {dimension_semantics = [#tpu.dimension_semantics<parallel>], iteration_bounds = array<i64: 1>, scalar_prefetch = 0 : i64, scratch_operands = 0 : i64, tpu.core_type = #tpu.core_type<tc>, window_params = [{transform_indices = @transform_0, window_bounds = array<i64: 8, 32>}, {pipeline_mode = #tpu.pipeline_mode<synchronous>, transform_indices = @transform_1, window_bounds = array<i64: 32, 10>}, {pipeline_mode = #tpu.pipeline_mode<synchronous>, transform_indices = @transform_2, window_bounds = array<i64: 1, 10>}, {transform_indices = @transform_3, window_bounds = array<i64: 8, 10>}]} {
    %c0 = arith.constant 0 : index
    %c0_0 = arith.constant 0 : index
    %0 = vector.load %arg1[%c0, %c0_0] : memref<8x32xf32, #tpu.memory_space<vmem>>, vector<8x32xf32>
    %c0_1 = arith.constant 0 : index
    %c0_2 = arith.constant 0 : index
    %1 = vector.load %arg2[%c0_1, %c0_2] : memref<32x10xf32, #tpu.memory_space<vmem>>, vector<32x10xf32>
    %cst = arith.constant dense<0.000000e+00> : vector<8x10xf32>
    %2 = tpu.matmul %0, %1, %cst {dimension_numbers = #tpu.dot_dimension_numbers<[1], [0], [0], [1], [0, 0, 1, 1], [], []>} : vector<8x32xf32>, vector<32x10xf32>, vector<8x10xf32> -> vector<8x10xf32>
    %c0_3 = arith.constant 0 : index
    %c0_4 = arith.constant 0 : index
    %3 = vector.load %arg3[%c0_3, %c0_4] : memref<1x10xf32, #tpu.memory_space<vmem>>, vector<1x10xf32>
    %4 = vector.broadcast %3 : vector<1x10xf32> to vector<8x10xf32>
    %5 = arith.addf %2, %4 : vector<8x10xf32>
    %c0_5 = arith.constant 0 : index
    %c0_6 = arith.constant 0 : index
    %6 = vector.load %arg4[%c0_5, %c0_6] : memref<8x10xf32, #tpu.memory_space<vmem>>, vector<8x10xf32>
    tpu.vector_store %arg4[%c0_5, %c0_6], %5 {strides = array<i32>} : memref<8x10xf32, #tpu.memory_space<vmem>>, vector<8x10xf32>,
    return
  }
  func.func @transform_0(%arg0: i32) -> (i32, i32) {
    %c0_i32 = arith.constant 0 : i32
    %c0_i32_0 = arith.constant 0 : i32
    return %arg0, %c0_i32 : i32, i32
  }
  func.func @transform_1(%arg0: i32) -> (i32, i32) {
    %c0_i32 = arith.constant 0 : i32
    %c0_i32_0 = arith.constant 0 : i32
    %c0_i32_1 = arith.constant 0 : i32
    return %c0_i32, %c0_i32_0 : i32, i32
  }
  func.func @transform_2(%arg0: i32) -> (i32, i32) {
    %c0_i32 = arith.constant 0 : i32
    %c0_i32_0 = arith.constant 0 : i32
    %c0_i32_1 = arith.constant 0 : i32
    return %c0_i32, %c0_i32_0 : i32, i32
  }
  func.func @transform_3(%arg0: i32) -> (i32, i32) {
    %c0_i32 = arith.constant 0 : i32
    %c0_i32_0 = arith.constant 0 : i32
    return %arg0, %c0_i32 : i32, i32
  }
}

</mosaic_0001>

<bundles_post_ra>
// kernel: logistic_reg_net_forward.1
= control target key start
LH: loop header
LB: loop body
LE: loop exit
PB: predicated region body
PF: predicated region fallthrough
CT: control target
= control target key end

     0   :  { %v169_v3 = vmov 0.0|0.0   ;;  %vm170_vm0 = vmmov 0   ;;  %v171_v6 = vmov 0.0   ;;  %s223_s0 = inlined_call_operand.vmem [shape: f32[8,32], index: 0, kind: input, shape index: {}]   ;;  %s224_s1 = inlined_call_operand.vmem [shape: f32[32,10], index: 1, kind: input, shape index: {}]   ;;  %s225_s2 = inlined_call_operand.vmem [shape: f32[1,10], index: 2, kind: input, shape index: {}]   ;;  %s226_s3 = inlined_call_operand.hbm [shape: f32[8,10], index: 3, kind: output, shape index: {}]  }
   0x1   :  { %v16_v0 = vld [vmem:[%s224_s1] sm:$0xff]  ;;  %v17_v1 = vld [vmem:[%s224_s1 + $0x8] sm:$0xff]  ;;  %v18_v2 = vld [vmem:[%s224_s1 + $0x10] sm:$0xff]  ;;  %135 = vmatprep.subr.bf16.mxu0 %v169_v3  ;;  %132 = vmatprep.mubr.msk.f32.mxu0 %vm170_vm0, %v171_v6 }
   0x2   :  { %v136_v4 = vpack.c.bf16 %v17_v1, %v16_v0  ;;  %v19_v5 = vld [vmem:[%s224_s1 + $0x18] sm:$0xff] }
   0x3   :  { %8 = vsyncpa [#allocation3], 0  ;;  %v139_v7 = vpack.c.bf16 %v19_v5, %v18_v2  ;;  %v15_v8 = vld [vmem:[%s223_s0] sm:$0xff]  ;;  %vm27_vm1 = vcmask 261120   ;;  %s172_s24 = smov [#allocation2]   ;;  %vm101_vm2 = vcmask 80896  }
   0x4   :  { %137 = vmatpush3.bf16.msra.mxu0 %v136_v4  ;;  %v117_v9 = vld [vmem:[%s225_s2] ss:$0 sm:$0xff]  ;;  %s109_s1 = sshll.u32 %s172_s24, 4  ;;  %s110_s1 = int_to_ptr.vmem [resolvable:$true] %s109_s1 }
   0x5   :  { %138 = vmatprep.subr.bf16.mxu0 %v169_v3  ;;  %s145_s25 = scalar_lea.vmem %s110_s1, 128  ;;  %p150_p1 = scmp.lt.s32.totalorder %s110_s1, %s110_s1 }
   0x6   :  { %p146_p0 = scmp.ne.s32.totalorder %s110_s1, %s145_s25  ;;  %p151_p2 = scmp.lt.s32.totalorder %s145_s25, %s145_s25 }
   0x8   :  { %140 = vmatpush3.bf16.msra.mxu0 %v139_v7  ;;  %p152_p3 = por %p151_p2, %p150_p1 }
   0xa   :  { %p153_p4 = pnand %p152_p3, %p146_p0 }
   0xb   :  { %133 = vmatmul.mubr.msk.f32.vlgmr.msra.gmra.mrb[0].mxu0 %vm27_vm1, %v15_v8 }
  0xde   :  { %v97_v10 = vpop.f32.mrb[0].mxu0 }
  0xdf   :  { %v98_v11 = vadd.f32 %v117_v9, %v97_v10  ;;  %v134_v12 = vpop.f32.mrb[1].mxu0 }
  0xe1   :  { %102 = vst.msk [vmem:[#allocation2] sm:$0xff] %vm101_vm2, %v98_v11 }
  0xe2   :  { %156 = shalt.err (!%p153_p4)
}
  0xe3   :  { %s157_s27 = scalar_lea.hbm %s226_s3, 128 }
  0xe4   :  { %p158_p5 = scmp.ne.s32.totalorder %s226_s3, %s157_s27  ;;  %p161_p6 = scmp.lt.u32.totalorder %s157_s27, %s226_s3 }
  0xe6   :  { %p163_p7 = pnand %p161_p6, %p158_p5 }
  0xe8   :  { %166 = shalt.err (!%p163_p7)
}
  0xe9   :  { %112 = dma.vmem_to_hbm [thread:$0]  %s110_s1, 128, %s226_s3, [#allocation3]  }
  0xea   :  { %167 = dma.done.wait [#allocation3], 128  }
  0xeb   :  { %168 = vsyncadd [#allocation3], 4294967168 }
  0xec   :  { %116 = vsyncpa [#allocation3], 1 }

</bundles_post_ra>
